<compile_context>
chip_gen: v7x
topology: tpu7x:2x2x1
jax: 0.10.0
libtpu: 0.0.40
codegen_flags: <defaults>
</compile_context>

<pallas_src>
import jax
import jax.numpy as jnp
from jax.experimental import pallas as pl
from jax.experimental.pallas import tpu as pltpu

H1 = 128
H2 = 256
OUT = 1

_MAX_TILE_B = 8192                 # upper bound on batch-tile rows
_VMEM_BUDGET = 30 * 1024 * 1024    # working-set budget used to size the tile
_VMEM_LIMIT = 48 * 1024 * 1024     # scoped-VMEM limit (< v7x 64 MiB physical)


def _round_up(x, m):
    return ((x + m - 1) // m) * m


def _round_down(x, m):
    return (x // m) * m


def _choose_tile_b(batch, state_size):
    """VMEM-budget-derived batch tile; multiple of 256 when tiling, never > batch."""
    # Conservative per-row working set: double-buffered state stream (assume
    # f32 worst case), f32 h1 + bf16 copy, two concurrent H2-wide f32 temps.
    per_row = 2 * 4 * state_size + 4 * H1 + 2 * H1 + 2 * 4 * H2 + 16
    cap = max(256, min(_MAX_TILE_B, _round_down(_VMEM_BUDGET // per_row, 256)))
    if batch < 1024 and batch <= cap:
        return batch                        # whole batch in a single block
    n_steps = max(2, pl.cdiv(batch, cap))   # >=2 steps: both v7x TCs get work
    tile_b = min(_round_up(pl.cdiv(batch, n_steps), 256), cap)
    return tile_b                           # multiple of 256 and <= batch here


def _critic_kernel(x_ref, w1_ref, b1_ref, w2_ref, b2_ref, w3_ref, b3_ref, o_ref):
    # Layer 1: (TB, S) @ (S, 128) + (1, 128), ReLU.  bf16 operands, f32 acc.
    x = x_ref[...].astype(jnp.bfloat16)      # no-op when producer streams bf16
    h1 = jnp.dot(x, w1_ref[...], preferred_element_type=jnp.float32)
    h1 = jnp.maximum(h1 + b1_ref[...], 0.0)

    # Layer 2: (TB, 128) @ (128, 256) + (1, 256), ReLU.
    h2 = jnp.dot(h1.astype(jnp.bfloat16), w2_ref[...],
                 preferred_element_type=jnp.float32)
    h2 = jnp.maximum(h2 + b2_ref[...], 0.0)

    # Layer 3 (N=1): VPU multiply + lane reduction; emit a lane-dense row so
    # the store is dense vst instead of tile_b/8 masked single-lane stores.
    v = jnp.sum(h2 * w3_ref[...], axis=-1)          # (TB,)
    row = v.reshape(1, -1) + b3_ref[...]            # (1, TB) + (1, 1)
    o_ref[...] = row.astype(o_ref.dtype)


def critic_forward(state, params, *, tile_b=None):
    """state: (B, state_size) bf16 (preferred) or f32 -> value: (B, 1) f32."""
    w1, b1, w2, b2, w3, b3 = params
    B, S = state.shape

    if tile_b is None:
        tile_b = _choose_tile_b(B, S)
    n_steps = pl.cdiv(B, tile_b)
    padded_b = n_steps * tile_b

    # Constant index_map -> parameter block stays resident in VMEM across steps.
    const = lambda arr: pl.BlockSpec(arr.shape, lambda i: (0,) * arr.ndim)

    flops = 2 * padded_b * (S * H1 + H1 * H2 + H2)
    bytes_accessed = (state.size * state.dtype.itemsize
                      + sum(p.size * p.dtype.itemsize for p in params)
                      + padded_b * 4)

    out = pl.pallas_call(
        _critic_kernel,
        out_shape=jax.ShapeDtypeStruct((1, padded_b), jnp.float32),
        grid=(n_steps,),
        in_specs=[
            pl.BlockSpec((tile_b, S), lambda i: (i, 0)),   # state: batch-tiled
            const(w1), const(b1),
            const(w2), const(b2),
            const(w3), const(b3),
        ],
        out_specs=pl.BlockSpec((1, tile_b), lambda i: (0, i)),  # lane-dense row
        compiler_params=pltpu.CompilerParams(
            dimension_semantics=("parallel",),
            vmem_limit_bytes=_VMEM_LIMIT,
        ),
        cost_estimate=pl.CostEstimate(
            flops=flops, transcendentals=0, bytes_accessed=bytes_accessed),
    )(state, w1, b1, w2, b2, w3, b3)

    return out[0, :B].reshape(B, 1)


def init_params(key, state_size):
    """Init mimicking torch.nn.Linear default U[-1/sqrt(fan_in), +1/sqrt(fan_in)].

    Layout for the kernel:
      w1: (state_size, 128) bf16   b1: (1, 128) f32
      w2: (128, 256)        bf16   b2: (1, 256) f32
      w3: (1, 256)          f32    b3: (1, 1)   f32   (VPU-reduced layer)
    """
    def linear(k, fan_in, fan_out, w_dtype):
        kw, kb = jax.random.split(k)
        bound = 1.0 / jnp.sqrt(fan_in)
        w = jax.random.uniform(kw, (fan_in, fan_out), jnp.float32, -bound, bound)
        b = jax.random.uniform(kb, (1, fan_out), jnp.float32, -bound, bound)
        return w.astype(w_dtype), b

    k1, k2, k3 = jax.random.split(key, 3)
    w1, b1 = linear(k1, state_size, H1, jnp.bfloat16)
    w2, b2 = linear(k2, H1, H2, jnp.bfloat16)
    w3_col, b3 = linear(k3, H2, OUT, jnp.float32)
    w3 = w3_col.reshape(1, H2)  # stored row-major for the VPU reduce
    return (w1, b1, w2, b2, w3, b3)


def critic_reference_bf16(state, params):
    """Pure-JAX reference mirroring the kernel's bf16-operand / f32-acc math."""
    w1, b1, w2, b2, w3, b3 = params
    h1 = jnp.dot(state.astype(jnp.bfloat16), w1,
                 preferred_element_type=jnp.float32)
    h1 = jnp.maximum(h1 + b1, 0.0)
    h2 = jnp.dot(h1.astype(jnp.bfloat16), w2,
                 preferred_element_type=jnp.float32)
    h2 = jnp.maximum(h2 + b2, 0.0)
    return jnp.sum(h2 * w3, axis=-1, keepdims=True) + b3


def critic_reference_f32(state, params):
    """Full-f32 reference matching the PyTorch module's numerics (same params)."""
    w1, b1, w2, b2, w3, b3 = params
    x = state.astype(jnp.float32)
    h1 = jnp.maximum(x @ w1.astype(jnp.float32) + b1, 0.0)
    h2 = jnp.maximum(h1 @ w2.astype(jnp.float32) + b2, 0.0)
    return h2 @ w3.astype(jnp.float32).T + b3


if __name__ == "__main__":
    key = jax.random.PRNGKey(0)
    k_params, k_small, k_large = jax.random.split(key, 3)

    state_size, action_size = 32, 4   # action_size is unused by Critic.forward
    params = init_params(k_params, state_size)

    # --- Small batch: single-block path --------------------------------------
    batch = 8
    state_small = jax.random.normal(
        k_small, (batch, state_size), jnp.float32).astype(jnp.bfloat16)
    value_small = jax.block_until_ready(critic_forward(state_small, params))
    assert value_small.shape == (batch, OUT), value_small.shape

    ref_mirror = critic_reference_bf16(state_small, params)
    ref_f32 = critic_reference_f32(state_small, params)
    assert jnp.allclose(value_small, ref_mirror, atol=5e-3, rtol=5e-3), \
        "mismatch vs bf16 reference"
    assert jnp.allclose(value_small, ref_f32, atol=5e-2, rtol=5e-2), \
        "mismatch vs f32 reference"

    # --- Larger ragged batch: multi-step grid + boundary block + lane-dense out
    big_batch = 2100
    state_large = jax.random.normal(
        k_large, (big_batch, state_size), jnp.float32).astype(jnp.bfloat16)
    value_large = jax.block_until_ready(critic_forward(state_large, params))
    assert value_large.shape == (big_batch, OUT), value_large.shape
    assert jnp.allclose(value_large, critic_reference_bf16(state_large, params),
                        atol=5e-3, rtol=5e-3), "mismatch vs bf16 reference (big)"

    print("KERNEL_OK")
</pallas_src>

<mosaic_0001>
module attributes {stable_mosaic.version = 11 : i64} {
  func.func @_critic_kernel(%arg0: i32, %arg1: memref<8x32xbf16, #tpu.memory_space<vmem>>, %arg2: memref<32x128xbf16, #tpu.memory_space<vmem>>, %arg3: memref<1x128xf32, #tpu.memory_space<vmem>>, %arg4: memref<128x256xbf16, #tpu.memory_space<vmem>>, %arg5: memref<1x256xf32, #tpu.memory_space<vmem>>, %arg6: memref<1x256xf32, #tpu.memory_space<vmem>>, %arg7: memref<1x1xf32, #tpu.memory_space<vmem>>, %arg8: memref<1x8xf32, #tpu.memory_space<vmem>>) attributes {dimension_semantics = [#tpu.dimension_semantics<parallel>], iteration_bounds = array<i64: 1>, scalar_prefetch = 0 : i64, scratch_operands = 0 : i64, tpu.core_type = #tpu.core_type<tc>, window_params = [{transform_indices = @transform_0, window_bounds = array<i64: 8, 32>}, {pipeline_mode = #tpu.pipeline_mode<synchronous>, transform_indices = @transform_1, window_bounds = array<i64: 32, 128>}, {pipeline_mode = #tpu.pipeline_mode<synchronous>, transform_indices = @transform_2, window_bounds = array<i64: 1, 128>}, {pipeline_mode = #tpu.pipeline_mode<synchronous>, transform_indices = @transform_3, window_bounds = array<i64: 128, 256>}, {pipeline_mode = #tpu.pipeline_mode<synchronous>, transform_indices = @transform_4, window_bounds = array<i64: 1, 256>}, {pipeline_mode = #tpu.pipeline_mode<synchronous>, transform_indices = @transform_5, window_bounds = array<i64: 1, 256>}, {pipeline_mode = #tpu.pipeline_mode<synchronous>, transform_indices = @transform_6, window_bounds = array<i64: 1, 1>}, {transform_indices = @transform_7, window_bounds = array<i64: 1, 8>}]} {
    %c0 = arith.constant 0 : index
    %c0_0 = arith.constant 0 : index
    %0 = vector.load %arg1[%c0, %c0_0] : memref<8x32xbf16, #tpu.memory_space<vmem>>, vector<8x32xbf16>
    %c0_1 = arith.constant 0 : index
    %c0_2 = arith.constant 0 : index
    %1 = vector.load %arg2[%c0_1, %c0_2] : memref<32x128xbf16, #tpu.memory_space<vmem>>, vector<32x128xbf16>
    %cst = arith.constant dense<0.000000e+00> : vector<8x128xf32>
    %2 = tpu.matmul %0, %1, %cst {dimension_numbers = #tpu.dot_dimension_numbers<[1], [0], [0], [1], [0, 0, 1, 1], [], []>} : vector<8x32xbf16>, vector<32x128xbf16>, vector<8x128xf32> -> vector<8x128xf32>
    %c0_3 = arith.constant 0 : index
    %c0_4 = arith.constant 0 : index
    %3 = vector.load %arg3[%c0_3, %c0_4] : memref<1x128xf32, #tpu.memory_space<vmem>>, vector<1x128xf32>
    %4 = vector.broadcast %3 : vector<1x128xf32> to vector<8x128xf32>
    %5 = arith.addf %2, %4 : vector<8x128xf32>
    %cst_5 = arith.constant 0.000000e+00 : f32
    %6 = vector.broadcast %cst_5 : f32 to vector<8x128xf32>
    %7 = arith.maximumf %5, %6 : vector<8x128xf32>
    %8 = arith.truncf %7 : vector<8x128xf32> to vector<8x128xbf16>
    %c0_6 = arith.constant 0 : index
    %c0_7 = arith.constant 0 : index
    %9 = vector.load %arg4[%c0_6, %c0_7] : memref<128x256xbf16, #tpu.memory_space<vmem>>, vector<128x256xbf16>
    %cst_8 = arith.constant dense<0.000000e+00> : vector<8x256xf32>
    %10 = tpu.matmul %8, %9, %cst_8 {dimension_numbers = #tpu.dot_dimension_numbers<[1], [0], [0], [1], [0, 0, 1, 1], [], []>} : vector<8x128xbf16>, vector<128x256xbf16>, vector<8x256xf32> -> vector<8x256xf32>
    %c0_9 = arith.constant 0 : index
    %c0_10 = arith.constant 0 : index
    %11 = vector.load %arg5[%c0_9, %c0_10] : memref<1x256xf32, #tpu.memory_space<vmem>>, vector<1x256xf32>
    %12 = vector.broadcast %11 : vector<1x256xf32> to vector<8x256xf32>
    %13 = arith.addf %10, %12 : vector<8x256xf32>
    %cst_11 = arith.constant 0.000000e+00 : f32
    %14 = vector.broadcast %cst_11 : f32 to vector<8x256xf32>
    %15 = arith.maximumf %13, %14 : vector<8x256xf32>
    %c0_12 = arith.constant 0 : index
    %c0_13 = arith.constant 0 : index
    %16 = vector.load %arg6[%c0_12, %c0_13] : memref<1x256xf32, #tpu.memory_space<vmem>>, vector<1x256xf32>
    %17 = vector.broadcast %16 : vector<1x256xf32> to vector<8x256xf32>
    %18 = arith.mulf %15, %17 : vector<8x256xf32>
    %cst_14 = arith.constant dense<0.000000e+00> : vector<8xf32>
    %19 = vector.multi_reduction <add>, %18, %cst_14 [1] : vector<8x256xf32> to vector<8xf32>
    %20 = vector.shape_cast %19 : vector<8xf32> to vector<1x8xf32>
    %c0_15 = arith.constant 0 : index
    %c0_16 = arith.constant 0 : index
    %21 = vector.load %arg7[%c0_15, %c0_16] : memref<1x1xf32, #tpu.memory_space<vmem>>, vector<1x1xf32>
    %22 = vector.broadcast %21 : vector<1x1xf32> to vector<1x8xf32>
    %23 = arith.addf %20, %22 : vector<1x8xf32>
    %c0_17 = arith.constant 0 : index
    %c0_18 = arith.constant 0 : index
    %24 = vector.load %arg8[%c0_17, %c0_18] : memref<1x8xf32, #tpu.memory_space<vmem>>, vector<1x8xf32>
    tpu.vector_store %arg8[%c0_17, %c0_18], %23 {strides = array<i32>} : memref<1x8xf32, #tpu.memory_space<vmem>>, vector<1x8xf32>,
    return
  }
  func.func @transform_0(%arg0: i32) -> (i32, i32) {
    %c0_i32 = arith.constant 0 : i32
    %c0_i32_0 = arith.constant 0 : i32
    return %arg0, %c0_i32 : i32, i32
  }
  func.func @transform_1(%arg0: i32) -> (i32, i32) {
    %c0_i32 = arith.constant 0 : i32
    %c0_i32_0 = arith.constant 0 : i32
    %c0_i32_1 = arith.constant 0 : i32
    return %c0_i32, %c0_i32_0 : i32, i32
  }
  func.func @transform_2(%arg0: i32) -> (i32, i32) {
    %c0_i32 = arith.constant 0 : i32
    %c0_i32_0 = arith.constant 0 : i32
    %c0_i32_1 = arith.constant 0 : i32
    return %c0_i32, %c0_i32_0 : i32, i32
  }
  func.func @transform_3(%arg0: i32) -> (i32, i32) {
    %c0_i32 = arith.constant 0 : i32
    %c0_i32_0 = arith.constant 0 : i32
    %c0_i32_1 = arith.constant 0 : i32
    return %c0_i32, %c0_i32_0 : i32, i32
  }
  func.func @transform_4(%arg0: i32) -> (i32, i32) {
    %c0_i32 = arith.constant 0 : i32
    %c0_i32_0 = arith.constant 0 : i32
    %c0_i32_1 = arith.constant 0 : i32
    return %c0_i32, %c0_i32_0 : i32, i32
  }
  func.func @transform_5(%arg0: i32) -> (i32, i32) {
    %c0_i32 = arith.constant 0 : i32
    %c0_i32_0 = arith.constant 0 : i32
    %c0_i32_1 = arith.constant 0 : i32
    return %c0_i32, %c0_i32_0 : i32, i32
  }
  func.func @transform_6(%arg0: i32) -> (i32, i32) {
    %c0_i32 = arith.constant 0 : i32
    %c0_i32_0 = arith.constant 0 : i32
    %c0_i32_1 = arith.constant 0 : i32
    return %c0_i32, %c0_i32_0 : i32, i32
  }
  func.func @transform_7(%arg0: i32) -> (i32, i32) {
    %c0_i32 = arith.constant 0 : i32
    %c0_i32_0 = arith.constant 0 : i32
    return %c0_i32, %arg0 : i32, i32
  }
}

</mosaic_0001>

<bundles_post_ra>
// kernel: tpu_custom_call.1
= control target key start
LH: loop header
LB: loop body
LE: loop exit
PB: predicated region body
PF: predicated region fallthrough
CT: control target
= control target key end

     0   :  { %s618_s0 = inlined_call_operand.hbm [shape: bf16[8,32], index: 0, kind: input, shape index: {}]   ;;  %s619_s1 = inlined_call_operand.hbm [shape: bf16[32,128], index: 1, kind: input, shape index: {}]   ;;  %s620_s2 = inlined_call_operand.vmem [shape: f32[1,128], index: 2, kind: input, shape index: {}]   ;;  %s621_s3 = inlined_call_operand.hbm [shape: bf16[128,256], index: 3, kind: input, shape index: {}]   ;;  %s622_s4 = inlined_call_operand.vmem [shape: f32[1,256], index: 4, kind: input, shape index: {}]   ;;  %s623_s5 = inlined_call_operand.vmem [shape: f32[1,256], index: 5, kind: input, shape index: {}]   ;;  %s624_s6 = inlined_call_operand.<no memory space> [shape: f32[1,1], index: 6, kind: input, shape index: {}]   ;;  %s625_s7 = inlined_call_operand.hbm [shape: f32[1,8], index: 7, kind: output, shape index: {}]  }
   0x1   :  { %v12_v0 = vstv %s624_s6 }
   0x2   :  { %13 = vst [vmem:[#allocation2] sm:$0x1] %v12_v0 }
   0x3   :  { %14 = vsyncpa [#allocation4], 0 }
   0x4   :  { %15 = vsyncpa [#allocation7], 0 }
   0x5   :  { %16 = vsyncpa [#allocation5], 0  ;;  %s507_s26 = smov [#allocation6]   ;;  %s413_s30 = scalar_lea.hbm %s619_s1, 256 }
   0x6   :  { %s32_s27 = sshll.u32 %s507_s26, 4  ;;  %p414_p0 = scmp.ne.s32.totalorder %s619_s1, %s413_s30  ;;  %s33_s27 = int_to_ptr.vmem [resolvable:$true] %s32_s27 }
   0x7   :  { %p417_p1 = scmp.lt.u32.totalorder %s413_s30, %s619_s1 }
   0x9   :  { %p419_p2 = pnand %p417_p1, %p414_p0 }
   0xb   :  { %422 = shalt.err (!%p419_p2)
}
   0xc   :  { %s423_s6 = scalar_lea.vmem %s33_s27, 256  ;;  %p428_p4 = scmp.lt.s32.totalorder %s33_s27, %s33_s27 }
   0xd   :  { %p424_p3 = scmp.ne.s32.totalorder %s33_s27, %s423_s6  ;;  %p429_p5 = scmp.lt.s32.totalorder %s423_s6, %s423_s6 }
   0xf   :  { %p430_p6 = por %p429_p5, %p428_p4 }
  0x11   :  { %p431_p7 = pnand %p430_p6, %p424_p3 }
  0x13   :  { %434 = shalt.err (!%p431_p7)
}
  0x14   :  { %s508_s12 = smov 64   ;;  %s509_s13 = smov 4  }
  0x15   :  { %38 = dma.hbm_to_vmem [thread:$0]  %s619_s1, 256, %s33_s27, [#allocation7], %s508_s12, %s508_s12, %s509_s13  }
  0x16   :  { %s510_s16 = smov [#allocation3]   ;;  %s511_s18 = smov [#allocation8]  }
  0x17   :  { %s23_s17 = sshll.u32 %s510_s16, 4  ;;  %s46_s19 = sshll.u32 %s511_s18, 4  ;;  %s24_s17 = int_to_ptr.vmem [resolvable:$true] %s23_s17  ;;  %s47_s19 = int_to_ptr.vmem [resolvable:$true] %s46_s19 }
  0x18   :  { %s435_s22 = scalar_lea.hbm %s618_s0, 64 }
  0x19   :  { %p436_p8 = scmp.ne.s32.totalorder %s618_s0, %s435_s22  ;;  %p439_p9 = scmp.lt.u32.totalorder %s435_s22, %s618_s0 }
  0x1b   :  { %p441_p10 = pnand %p439_p9, %p436_p8 }
  0x1d   :  { %444 = shalt.err (!%p441_p10)
}
  0x1e   :  { %s445_s1 = scalar_lea.vmem %s24_s17, 64  ;;  %p450_p12 = scmp.lt.s32.totalorder %s24_s17, %s24_s17 }
  0x1f   :  { %p446_p11 = scmp.ne.s32.totalorder %s24_s17, %s445_s1  ;;  %p451_p13 = scmp.lt.s32.totalorder %s445_s1, %s445_s1 }
  0x21   :  { %p452_p0 = por %p451_p13, %p450_p12 }
  0x23   :  { %p453_p1 = pnand %p452_p0, %p446_p11 }
  0x25   :  { %456 = shalt.err (!%p453_p1)
}
  0x26   :  { %26 = dma.hbm_to_vmem [thread:$0]  %s618_s0, 64, %s24_s17, [#allocation4]  }
  0x27   :  { %s457_s8 = scalar_lea.hbm %s621_s3, 2048 }
  0x28   :  { %p458_p2 = scmp.ne.s32.totalorder %s621_s3, %s457_s8  ;;  %p461_p3 = scmp.lt.u32.totalorder %s457_s8, %s621_s3 }
  0x2a   :  { %p463_p4 = pnand %p461_p3, %p458_p2 }
  0x2c   :  { %466 = shalt.err (!%p463_p4)
}
  0x2d   :  { %s467_s12 = scalar_lea.vmem %s47_s19, 2048  ;;  %p472_p6 = scmp.lt.s32.totalorder %s47_s19, %s47_s19 }
  0x2e   :  { %p468_p5 = scmp.ne.s32.totalorder %s47_s19, %s467_s12  ;;  %p473_p7 = scmp.lt.s32.totalorder %s467_s12, %s467_s12 }
  0x30   :  { %p474_p8 = por %p473_p7, %p472_p6 }
  0x32   :  { %p475_p9 = pnand %p474_p8, %p468_p5 }
  0x34   :  { %478 = shalt.err (!%p475_p9)
}
  0x35   :  { %s512_s0 = smov 128   ;;  %s513_s13 = smov 8  }
  0x36   :  { %52 = dma.hbm_to_vmem [thread:$0]  %s621_s3, 2048, %s47_s19, [#allocation7], %s512_s0, %s512_s0, %s513_s13  }
  0x37   :  { %501 = dma.done.wait [#allocation4], 64  }
  0x38   :  { %502 = vsyncadd [#allocation4], 4294967232 }
  0x39   :  { %503 = dma.done.wait [#allocation7], 2304  }
  0x3a   :  { %504 = vsyncadd [#allocation7], 4294964992  ;;  %v514_v1 = vmov 0.0   ;;  %vm515_vm0 = vmmov 0   ;;  %v387_v2 = vld [vmem:[#allocation6] sm:$0xff]   ;;  %v388_v3 = vld [vmem:[#allocation6 + $0x8] sm:$0xff]   ;;  %v157_v30 = vlaneseq }
  0x3b   :  { %367 = vmatprep.subr.bf16.mxu0 %v514_v1  ;;  %371 = vmatprep.mubr.msk.bf16.mxu0 %vm515_vm0, %v514_v1  ;;  %v389_v4 = vld [vmem:[#allocation8 + $0x4] ss:$8 sps:$4 sm:$0xff]   ;;  %v391_v5 = vld [vmem:[#allocation8] ss:$8 sps:$4 sm:$0xff]   ;;  %v392_v6 = vld [vmem:[#allocation8 + $0x14] ss:$8 sps:$4 sm:$0xff]  }
  0x3c   :  { %368 = vmatpush3.bf16.msra.mxu0 %v387_v2  ;;  %v69_v7 = vld [vmem:[#allocation3] sm:$0xf]  ;;  %247 = vmatprep.subr.bf16.mxu1 %v389_v4  ;;  %vm93_vm1 = vcmask 261120   ;;  %v394_v8 = vld [vmem:[#allocation8 + $0x10] ss:$8 sps:$4 sm:$0xff]   ;;  %v516_v21 = vmov 0  }
  0x3d   :  { %369 = vmatprep.subr.bf16.mxu0 %v514_v1  ;;  %248 = vmatpush1.bf16.msra.mxu1 %v391_v5  ;;  %v395_v9 = vld [vmem:[#allocation8 + $0x24] ss:$8 sps:$4 sm:$0xff]   ;;  %v397_v10 = vld [vmem:[#allocation8 + $0x20] ss:$8 sps:$4 sm:$0xff]   ;;  %v398_v11 = vld [vmem:[#allocation8 + $0x34] ss:$8 sps:$4 sm:$0xff]  }
  0x3e   :  { %249 = vmatprep.subr.bf16.mxu1 %v392_v6  ;;  %v400_v12 = vld [vmem:[#allocation8 + $0x30] ss:$8 sps:$4 sm:$0xff]   ;;  %v401_v13 = vld [vmem:[#allocation8 + $0x44] ss:$8 sps:$4 sm:$0xff]   ;;  %v403_v14 = vld [vmem:[#allocation8 + $0x40] ss:$8 sps:$4 sm:$0xff]   ;;  %279 = vmatprep.mubr.bf16.mxu1 %v516_v21 }
  0x3f   :  { %v404_v15 = vld [vmem:[#allocation8 + $0x54] ss:$8 sps:$4 sm:$0xff]   ;;  %v406_v16 = vld [vmem:[#allocation8 + $0x50] ss:$8 sps:$4 sm:$0xff]   ;;  %v407_v17 = vld [vmem:[#allocation8 + $0x64] ss:$8 sps:$4 sm:$0xff]   ;;  %386 = vset.pattern.permute.xlu0 %v516_v21 }
  0x40   :  { %370 = vmatpush3.bf16.msra.mxu0 %v388_v3  ;;  %v409_v18 = vld [vmem:[#allocation8 + $0x60] ss:$8 sps:$4 sm:$0xff]   ;;  %v410_v19 = vld [vmem:[#allocation8 + $0x74] ss:$8 sps:$4 sm:$0xff]   ;;  %v412_v20 = vld [vmem:[#allocation8 + $0x70] ss:$8 sps:$4 sm:$0xff]  }
  0x41   :  { %250 = vmatpush1.bf16.msra.mxu1 %v394_v8  ;;  %v344_v22 = vld [vmem:[%s620_s2] ss:$0 sm:$0xff]  ;;  %v158_v31 = vshrl.u32 %v157_v30, 7  ;;  %v320_v53 = vand.u32 127, %v157_v30  ;;  %vm326_vm2 = vcmask 57344  }
  0x42   :  { %251 = vmatprep.subr.bf16.mxu1 %v395_v9  ;;  %v155_v33 = vld [vmem:[%s622_s4] sm:$0x3]  ;;  %s517_s4 = smov [#allocation9]  }
  0x43   :  { %372 = vmatmul.mubr.msk.bf16.vlgmr.msra.gmra.mrb[0].mxu0 %vm93_vm1, %v69_v7  ;;  %v159_v32 = vsub.s32 0, %v158_v31  ;;  %v163_v34 = vsub.s32 1, %v158_v31  ;;  %v290_v37 = vld [vmem:[%s623_s5] sm:$0x3]  ;;  %v323_v55 = vsub.s32 %v320_v53, %v158_v31  ;;  %s334_s5 = sshll.u32 %s517_s4, 4  ;;  %s335_s5 = int_to_ptr.vmem [resolvable:$true] %s334_s5 }
  0x44   :  { %v307_v51 = vld [vmem:[#allocation2] sm:$0x1]  ;;  %s479_s20 = scalar_lea.vmem %s335_s5, 16  ;;  %s483_s21 = scalar_lea.vmem %s335_s5, 32 }
  0x45   :  { %252 = vmatpush1.bf16.msra.mxu1 %v397_v10  ;;  %v160_v35 = vrot.slane %v155_v33, %v159_v32  ;;  %v164_v36 = vrot.slane %v155_v33, %v163_v34  ;;  %v295_v41 = vrot.slane %v290_v37, %v159_v32  ;;  %v299_v44 = vrot.slane %v290_v37, %v163_v34  ;;  %p480_p10 = scmp.ne.s32.totalorder %s335_s5, %s479_s20  ;;  %p484_p11 = scmp.lt.s32.totalorder %s335_s5, %s335_s5 }
  0x46   :  { %253 = vmatprep.subr.bf16.mxu1 %v398_v11  ;;  %p485_p12 = scmp.lt.s32.totalorder %s483_s21, %s479_s20 }
  0x48   :  { %p486_p13 = por %p485_p12, %p484_p11 }
  0x49   :  { %254 = vmatpush1.bf16.msra.mxu1 %v400_v12 }
  0x4a   :  { %255 = vmatprep.subr.bf16.mxu1 %v401_v13  ;;  %p487_p0 = pnand %p486_p13, %p480_p10 }
  0x4d   :  { %256 = vmatpush1.bf16.msra.mxu1 %v403_v14 }
  0x4e   :  { %257 = vmatprep.subr.bf16.mxu1 %v404_v15 }
  0x51   :  { %258 = vmatpush1.bf16.msra.mxu1 %v406_v16 }
  0x52   :  { %259 = vmatprep.subr.bf16.mxu1 %v407_v17 }
  0x55   :  { %260 = vmatpush1.bf16.msra.mxu1 %v409_v18 }
  0x56   :  { %261 = vmatprep.subr.bf16.mxu1 %v410_v19 }
  0x59   :  { %262 = vmatpush1.bf16.msra.mxu1 %v412_v20 }
 0x116   :  { %v131_v23 = vpop.f32.mrb[0].mxu0 }
 0x117   :  { %v132_v24 = vadd.f32 %v344_v22, %v131_v23  ;;  %v373_v25 = vpop.f32.mrb[1].mxu0 }
 0x118   :  { %v134_v26 = vpop.f32.mrb[2].mxu0 }
 0x119   :  { %v137_v27 = vmax.f32 %v132_v24, 0.0  ;;  %v374_v28 = vpop.f32.mrb[3].mxu0 }
 0x11b   :  { %v138_v29 = vpack.c.bf16 %v137_v27, %v137_v27 }
 0x11d   :  { %280 = vmatmul.mubr.bf16.vlgmr.msra.gmra.mrb[0].mxu1 %v138_v29 }
 0x1f0   :  { %v281_v38 = vpop.f32.mrb[0].mxu1 }
 0x1f1   :  { %v282_v39 = vadd.f32 %v281_v38, %v160_v35  ;;  %v283_v40 = vpop.f32.mrb[1].mxu1 }
 0x1f2   :  { %v284_v42 = vadd.f32 %v283_v40, %v164_v36  ;;  %v285_v43 = vpop.f32.mrb[2].mxu1 }
 0x1f3   :  { %v288_v45 = vmax.f32 %v282_v39, 0.0  ;;  %v286_v46 = vpop.f32.mrb[3].mxu1 }
 0x1f4   :  { %v289_v47 = vmax.f32 %v284_v42, 0.0 }
 0x1f5   :  { %v302_v48 = vmul.f32 %v295_v41, %v288_v45 }
 0x1f6   :  { %v303_v49 = vmul.f32 %v299_v44, %v289_v47 }
 0x1f8   :  { %v304_v50 = vadd.f32 %v303_v49, %v302_v48 }
 0x1fa   :  { %305 = vadd.xlane.f32.xlu0 %v304_v50 }
 0x210   :  { %310 = vperm.xlu0 %386, %v307_v51  }
 0x287   :  { %v306_v52 = vpop.xlane.xlu0 %305 }
 0x28f   :  { %v311_v54 = vpop.permute.xlu0 %310 }
 0x290   :  { %v316_v56 = vrot.slane %v311_v54, %v159_v32 }
 0x292   :  { %v317_v57 = vadd.f32 %v316_v56, %v306_v52 }
 0x294   :  { %v324_v58 = vrot.slane %v317_v57, %v323_v55 }
 0x296   :  { %327 = vst.msk [vmem:[#allocation9] sm:$0x1] %vm326_vm2, %v324_v58 }
 0x297   :  { %490 = shalt.err (!%p487_p0)
}
 0x298   :  { %s491_s24 = scalar_lea.hbm %s625_s7, 16 }
 0x299   :  { %p492_p1 = scmp.ne.s32.totalorder %s625_s7, %s491_s24  ;;  %p495_p2 = scmp.lt.u32.totalorder %s491_s24, %s625_s7 }
 0x29b   :  { %p497_p3 = pnand %p495_p2, %p492_p1 }
 0x29d   :  { %500 = shalt.err (!%p497_p3)
}
 0x29e   :  { %337 = dma.vmem_to_hbm [thread:$0]  %s335_s5, 16, %s625_s7, [#allocation5]  }
 0x29f   :  { %505 = dma.done.wait [#allocation5], 16  }
 0x2a0   :  { %506 = vsyncadd [#allocation5], 4294967280 }
 0x2a1   :  { %341 = vsyncpa [#allocation4], 1 }
 0x2a2   :  { %342 = vsyncpa [#allocation7], 1 }
 0x2a3   :  { %343 = vsyncpa [#allocation5], 1 }

</bundles_post_ra>
